<compile_context>
chip_gen: v5e
topology: v5e:2x2
jax: 0.10.0
libtpu: 0.0.40
codegen_flags: <defaults>
</compile_context>

<pallas_src>
import jax
import jax.numpy as jnp
from jax.experimental import pallas as pl
from jax.experimental.pallas import tpu as pltpu

EPS = 1e-5
MASK_VALUE = -1e30
_BF16 = jnp.bfloat16
_F32 = jnp.float32


def _rmsnorm(t, w):
    var = jnp.mean(t * t, axis=-1, keepdims=True)
    return t * jax.lax.rsqrt(var + EPS) * w


def _rope_tables(S, Dh):
    inv_freq = 1.0 / (10000.0 ** (jnp.arange(0, Dh, 2, dtype=_F32) / Dh))
    freqs = jnp.outer(jnp.arange(S, dtype=_F32), inv_freq)          # (S, Dh/2)
    cos = jnp.concatenate([jnp.cos(freqs), jnp.cos(freqs)], axis=-1)  # (S, Dh)
    sin = jnp.concatenate([jnp.sin(freqs), jnp.sin(freqs)], axis=-1)  # (S, Dh)
    return cos, sin


# ---------------- Stage 1: token-tiled RMSNorm + column-tiled fused QKV ------

def _qkv_kernel(x_ref, nw_ref, w_ref, qkv_ref):
    xn = _rmsnorm(x_ref[...], nw_ref[...]).astype(_BF16)            # (TT, D)
    qkv_ref[...] = jnp.dot(xn, w_ref[...],
                           preferred_element_type=_F32).astype(_BF16)


# ---------------- Stage 2: flash-style causal attention with RoPE ------------

def _make_attn_kernel(H, Dh, TQ, TK):
    scale = float(Dh) ** -0.5
    half = Dh // 2

    if Dh % 128 == 0:
        def rotate_half(t):                                         # (R, H, Dh)
            sign = jnp.where(
                jax.lax.broadcasted_iota(jnp.int32, (1, 1, Dh), 2) < half,
                -1.0, 1.0)
            return pltpu.roll(t, half, axis=2) * sign               # [-x2, x1]
    else:
        def rotate_half(t):                                         # fallback
            t1 = t[..., :half]
            t2 = t[..., half:]
            return jnp.concatenate([-t2, t1], axis=-1)

    def rope(t, cos, sin):                                          # t: (R,H,Dh) f32
        return t * cos[:, None, :] + rotate_half(t) * sin[:, None, :]

    def head_major(t):                                              # (R,H,Dh)->(H,R,Dh)
        return jnp.stack([t[:, h, :] for h in range(H)], axis=0)

    def kernel(q_ref, k_ref, v_ref, cq_ref, sq_ref, ck_ref, sk_ref,
               ctx_ref, q_sc, m_sc, l_sc, acc_sc):
        qi = pl.program_id(1)
        ki = pl.program_id(2)
        q_start = qi * TQ
        k_start = ki * TK

        @pl.when(ki == 0)
        def _():
            m_sc[...] = jnp.full_like(m_sc, MASK_VALUE)
            l_sc[...] = jnp.zeros_like(l_sc)
            acc_sc[...] = jnp.zeros_like(acc_sc)
            q = q_ref[...].reshape(TQ, H, Dh).astype(_F32)
            q = rope(q, cq_ref[...], sq_ref[...]) * scale           # fold 1/sqrt(Dh)
            q_sc[...] = head_major(q).astype(_BF16)                 # (H, TQ, Dh)

        # Skip compute for fully-masked (upper-triangle) causal KV blocks.
        @pl.when(k_start <= q_start + TQ - 1)
        def _():
            k = k_ref[...].reshape(TK, H, Dh).astype(_F32)
            k = rope(k, ck_ref[...], sk_ref[...])
            kh = head_major(k).astype(_BF16)                        # (H, TK, Dh)
            vh = head_major(v_ref[...].reshape(TK, H, Dh))          # (H, TK, Dh) bf16

            s = jnp.einsum("hqd,hkd->hqk", q_sc[...], kh,
                           preferred_element_type=_F32)             # (H, TQ, TK)

            rows = q_start + jax.lax.broadcasted_iota(jnp.int32, (1, TQ, TK), 1)
            cols = k_start + jax.lax.broadcasted_iota(jnp.int32, (1, TQ, TK), 2)
            s = jnp.where(cols <= rows, s, MASK_VALUE)

            m_prev = m_sc[...]
            m_new = jnp.maximum(m_prev, jnp.max(s, axis=-1, keepdims=True))
            alpha = jnp.exp(m_prev - m_new)
            p = jnp.exp(s - m_new)
            l_sc[...] = alpha * l_sc[...] + jnp.sum(p, axis=-1, keepdims=True)
            acc_sc[...] = alpha * acc_sc[...] + jnp.einsum(
                "hqk,hkd->hqd", p.astype(_BF16), vh,
                preferred_element_type=_F32)
            m_sc[...] = m_new

        @pl.when(ki == pl.num_programs(2) - 1)
        def _():
            out = acc_sc[...] * pl.reciprocal(l_sc[...], approx=True)   # (H,TQ,Dh)
            out2d = jnp.concatenate([out[h] for h in range(H)], axis=-1)  # (TQ, D)
            ctx_ref[...] = out2d.reshape(1, TQ, H * Dh).astype(ctx_ref.dtype)

    return kernel


# ---------------- Stage 3a: column-tiled output projection + residual --------

def _wo_kernel(x_ref, ctx_ref, w_ref, o_ref):
    o_ref[...] = x_ref[...] + jnp.dot(ctx_ref[...], w_ref[...],
                                      preferred_element_type=_F32)


# ---------------- Stage 3b: RMSNorm + hidden-chunked SwiGLU MLP + residual ---

def _mlp_kernel(x1_ref, nw_ref, wg_ref, wu_ref, wd_ref, o_ref, xn_sc, acc_sc):
    hj = pl.program_id(1)

    @pl.when(hj == 0)
    def _():
        xn_sc[...] = _rmsnorm(x1_ref[...], nw_ref[...]).astype(_BF16)
        acc_sc[...] = jnp.zeros_like(acc_sc)

    xn = xn_sc[...]
    g = jnp.dot(xn, wg_ref[...], preferred_element_type=_F32)       # (TT, Hc)
    u = jnp.dot(xn, wu_ref[...], preferred_element_type=_F32)
    h = (g * jax.nn.sigmoid(g) * u).astype(_BF16)                   # silu(g) * u
    acc_sc[...] += jnp.dot(h, wd_ref[...], preferred_element_type=_F32)

    @pl.when(hj == pl.num_programs(1) - 1)
    def _():
        o_ref[...] = x1_ref[...] + acc_sc[...]


# ---------------- wrapper -----------------------------------------------------

def _round_up(x, m):
    return (x + m - 1) // m * m


def _pick_block(total, requested, align):
    b = min(requested, total)
    b -= b % align
    if b <= 0:
        return total
    while b > align and total % b != 0:
        b -= align
    return b if total % b == 0 else total


def _vmem_limit(block_bytes, scratch_bytes=0):
    need = 3 * int(block_bytes) + int(scratch_bytes) + (4 << 20)
    return int(min(64 << 20, max(32 << 20, need)))


def transformer_decoder_layer(
        x, params, *, num_heads,
        token_tile_rows=256, qkv_col_tile=512, wo_col_tile=512,
        mlp_hidden_tile=512, q_block=128, kv_block=128):
    """x: (B, S, D) fp32.  Returns (B, S, D) fp32."""
    B, S, D = x.shape
    H = num_heads
    assert D % H == 0, "embed_dim must be divisible by num_heads"
    Dh = D // H
    assert Dh % 2 == 0, "head_dim must be even for rotate-half RoPE"
    Hm = params["w_gate"].shape[1]
    T = B * S

    # ---- tile choices ----------------------------------------------------
    TT = max(8, min(_round_up(token_tile_rows, 8), _round_up(T, 8)))
    T_pad = _round_up(T, TT)
    n_tok = T_pad // TT
    TN1 = _pick_block(3 * D, qkv_col_tile, 128)
    TNo = _pick_block(D, wo_col_tile, 128)
    Hc = _pick_block(Hm, mlp_hidden_tile, 128)
    TQ = _pick_block(S, q_block, 8)
    TK = _pick_block(S, kv_block, 8)
    n_qkv_col, n_wo_col = 3 * D // TN1, D // TNo
    n_hc, n_q, n_kv = Hm // Hc, S // TQ, S // TK

    # ---- weights (consolidated where it helps, bf16 for the MXU) ----------
    wqkv = jnp.concatenate(
        [params["wq"], params["wk"], params["wv"]], axis=1).astype(_BF16)  # (D, 3D)
    wo = params["wo"].astype(_BF16)
    wg = params["w_gate"].astype(_BF16)
    wu = params["w_up"].astype(_BF16)
    wd = params["w_down"].astype(_BF16)
    anw = params["attn_norm_w"].reshape(1, D).astype(_F32)
    mnw = params["mlp_norm_w"].reshape(1, D).astype(_F32)
    cos, sin = _rope_tables(S, Dh)

    x_flat = x.reshape(T, D).astype(_F32)
    x_pad = jnp.pad(x_flat, ((0, T_pad - T), (0, 0))) if T_pad != T else x_flat

    # ---- Stage 1: RMSNorm + QKV (weight-stationary: column outer, token inner)
    s1_blocks = TT * D * 4 + D * 4 + D * TN1 * 2 + TT * TN1 * 2
    qkv_pad = pl.pallas_call(
        _qkv_kernel,
        out_shape=jax.ShapeDtypeStruct((T_pad, 3 * D), _BF16),
        grid=(n_qkv_col, n_tok),
        in_specs=[
            pl.BlockSpec((TT, D), lambda j, i: (i, 0)),
            pl.BlockSpec((1, D), lambda j, i: (0, 0)),
            pl.BlockSpec((D, TN1), lambda j, i: (0, j)),
        ],
        out_specs=pl.BlockSpec((TT, TN1), lambda j, i: (i, j)),
        compiler_params=pltpu.CompilerParams(
            dimension_semantics=("parallel", "parallel"),
            vmem_limit_bytes=_vmem_limit(s1_blocks)),
    )(x_pad, anw, wqkv)

    qkv = qkv_pad[:T] if T_pad != T else qkv_pad
    qkv_view = qkv.reshape(B, S, 3, H, Dh)      # free reshape, no XLA transpose

    # ---- Stage 2: flash attention over (B, q-block) parallel, kv "arbitrary"
    q_spec = pl.BlockSpec((1, TQ, 1, H, Dh), lambda b, qi, ki: (b, qi, 0, 0, 0))
    k_spec = pl.BlockSpec((1, TK, 1, H, Dh), lambda b, qi, ki: (b, ki, 1, 0, 0))
    v_spec = pl.BlockSpec((1, TK, 1, H, Dh), lambda b, qi, ki: (b, ki, 2, 0, 0))
    cq_spec = pl.BlockSpec((TQ, Dh), lambda b, qi, ki: (qi, 0))
    ck_spec = pl.BlockSpec((TK, Dh), lambda b, qi, ki: (ki, 0))
    s2_blocks = ((TQ + 2 * TK) * H * Dh * 2 + 2 * (TQ + TK) * Dh * 4 + TQ * D * 2)
    s2_scratch = H * TQ * Dh * (2 + 4) + 2 * H * TQ * 4
    ctx = pl.pallas_call(
        _make_attn_kernel(H, Dh, TQ, TK),
        out_shape=jax.ShapeDtypeStruct((B, S, D), _BF16),
        grid=(B, n_q, n_kv),
        in_specs=[q_spec, k_spec, v_spec, cq_spec, cq_spec, ck_spec, ck_spec],
        out_specs=pl.BlockSpec((1, TQ, D), lambda b, qi, ki: (b, qi, 0)),
        scratch_shapes=[
            pltpu.VMEM((H, TQ, Dh), _BF16),     # roped+scaled q (head-major)
            pltpu.VMEM((H, TQ, 1), _F32),       # running max
            pltpu.VMEM((H, TQ, 1), _F32),       # running denom
            pltpu.VMEM((H, TQ, Dh), _F32),      # output accumulator
        ],
        compiler_params=pltpu.CompilerParams(
            dimension_semantics=("parallel", "parallel", "arbitrary"),
            vmem_limit_bytes=_vmem_limit(s2_blocks, s2_scratch)),
    )(qkv_view, qkv_view, qkv_view, cos, sin, cos, sin)

    ctx_flat = ctx.reshape(T, D)                # free reshape, no XLA transpose
    ctx_pad = (jnp.pad(ctx_flat, ((0, T_pad - T), (0, 0)))
               if T_pad != T else ctx_flat)

    # ---- Stage 3a: attention output projection + residual --------------------
    s3a_blocks = 2 * TT * TNo * 4 + TT * D * 2 + D * TNo * 2
    x1_pad = pl.pallas_call(
        _wo_kernel,
        out_shape=jax.ShapeDtypeStruct((T_pad, D), _F32),
        grid=(n_wo_col, n_tok),
        in_specs=[
            pl.BlockSpec((TT, TNo), lambda j, i: (i, j)),
            pl.BlockSpec((TT, D), lambda j, i: (i, 0)),
            pl.BlockSpec((D, TNo), lambda j, i: (0, j)),
        ],
        out_specs=pl.BlockSpec((TT, TNo), lambda j, i: (i, j)),
        compiler_params=pltpu.CompilerParams(
            dimension_semantics=("parallel", "parallel"),
            vmem_limit_bytes=_vmem_limit(s3a_blocks)),
    )(x_pad, ctx_pad, wo)

    # ---- Stage 3b: RMSNorm + hidden-chunked SwiGLU MLP + residual ------------
    s3b_blocks = 2 * TT * D * 4 + D * 4 + 3 * D * Hc * 2
    s3b_scratch = TT * D * (2 + 4)
    out_pad = pl.pallas_call(
        _mlp_kernel,
        out_shape=jax.ShapeDtypeStruct((T_pad, D), _F32),
        grid=(n_tok, n_hc),
        in_specs=[
            pl.BlockSpec((TT, D), lambda i, hj: (i, 0)),
            pl.BlockSpec((1, D), lambda i, hj: (0, 0)),
            pl.BlockSpec((D, Hc), lambda i, hj: (0, hj)),
            pl.BlockSpec((D, Hc), lambda i, hj: (0, hj)),
            pl.BlockSpec((Hc, D), lambda i, hj: (hj, 0)),
        ],
        out_specs=pl.BlockSpec((TT, D), lambda i, hj: (i, 0)),
        scratch_shapes=[
            pltpu.VMEM((TT, D), _BF16),         # normalized x1
            pltpu.VMEM((TT, D), _F32),          # down-projection accumulator
        ],
        compiler_params=pltpu.CompilerParams(
            dimension_semantics=("parallel", "arbitrary"),
            vmem_limit_bytes=_vmem_limit(s3b_blocks, s3b_scratch)),
    )(x1_pad, mnw, wg, wu, wd)

    out = out_pad[:T] if T_pad != T else out_pad
    return out.reshape(B, S, D)


# ---------------- pure-JAX reference (same math & precision choices) ----------

def reference_layer(x, params, *, num_heads):
    B, S, D = x.shape
    H = num_heads
    Dh = D // H
    bf16, f32 = jnp.bfloat16, jnp.float32
    scale = float(Dh) ** -0.5
    cos, sin = _rope_tables(S, Dh)

    def mm(a, w):                                          # bf16 GEMM, fp32 accum
        return jnp.dot(a.astype(bf16), w.astype(bf16), preferred_element_type=f32)

    def rope(t):                                           # (B, S, H, Dh) f32
        half = Dh // 2
        t1, t2 = t[..., :half], t[..., half:]
        rot = jnp.concatenate([-t2, t1], axis=-1)
        return t * cos[None, :, None, :] + rot * sin[None, :, None, :]

    xn = _rmsnorm(x, params["attn_norm_w"])
    q = mm(xn, params["wq"]).astype(bf16).astype(f32).reshape(B, S, H, Dh)
    k = mm(xn, params["wk"]).astype(bf16).astype(f32).reshape(B, S, H, Dh)
    v = mm(xn, params["wv"]).astype(bf16).reshape(B, S, H, Dh)

    q = (rope(q) * scale).astype(bf16)
    k = rope(k).astype(bf16)

    scores = jnp.einsum("bqhd,bkhd->bhqk", q, k, preferred_element_type=f32)
    causal = jnp.tril(jnp.ones((S, S), dtype=bool))
    scores = jnp.where(causal[None, None], scores, MASK_VALUE)
    p = jax.nn.softmax(scores, axis=-1)
    ctx = jnp.einsum("bhqk,bkhd->bqhd", p.astype(bf16), v,
                     preferred_element_type=f32).astype(bf16).reshape(B, S, D)

    x1 = x + mm(ctx, params["wo"])
    xn2 = _rmsnorm(x1, params["mlp_norm_w"])
    g = mm(xn2, params["w_gate"])
    u = mm(xn2, params["w_up"])
    return x1 + mm(jax.nn.silu(g) * u, params["w_down"])


if __name__ == "__main__":
    B, S, H, Dh = 2, 16, 2, 128
    D = H * Dh
    Hm = 256

    key = jax.random.PRNGKey(0)
    keys = jax.random.split(key, 10)
    params = {
        "attn_norm_w": 1.0 + 0.05 * jax.random.normal(keys[8], (D,), jnp.float32),
        "mlp_norm_w": 1.0 + 0.05 * jax.random.normal(keys[9], (D,), jnp.float32),
        "wq": jax.random.normal(keys[0], (D, D), jnp.float32) * 0.05,
        "wk": jax.random.normal(keys[1], (D, D), jnp.float32) * 0.05,
        "wv": jax.random.normal(keys[2], (D, D), jnp.float32) * 0.05,
        "wo": jax.random.normal(keys[3], (D, D), jnp.float32) * 0.05,
        "w_gate": jax.random.normal(keys[4], (D, Hm), jnp.float32) * 0.05,
        "w_up": jax.random.normal(keys[5], (D, Hm), jnp.float32) * 0.05,
        "w_down": jax.random.normal(keys[6], (Hm, D), jnp.float32) * 0.05,
    }
    x = jax.random.normal(keys[7], (B, S, D), jnp.float32)

    # Small tile sizes so the toy shapes exercise every multi-tile path
    # (2 token tiles, 3 QKV column tiles, 2x2 flash q/kv blocks, 2 wo column
    # tiles, 2 SwiGLU hidden chunks).  Defaults target production shapes.
    out = transformer_decoder_layer(
        x, params, num_heads=H,
        token_tile_rows=16, qkv_col_tile=256, wo_col_tile=128,
        mlp_hidden_tile=128, q_block=8, kv_block=8)
    out = jax.block_until_ready(out)

    ref = reference_layer(x, params, num_heads=H)
    assert out.shape == (B, S, D)
    err = float(jnp.max(jnp.abs(out - ref)))
    # Tolerance covers bf16 inter-stage tensors, online- vs exact-softmax
    # accumulation order, and the approximate EUP reciprocal.
    assert jnp.allclose(out, ref, rtol=2e-2, atol=2e-2), f"max abs err = {err}"

    print("KERNEL_OK")
</pallas_src>

<mosaic_0001>
module attributes {stable_mosaic.version = 11 : i64} {
  func.func @_qkv_kernel(%arg0: i32, %arg1: i32, %arg2: memref<16x256xf32, #tpu.memory_space<vmem>>, %arg3: memref<1x256xf32, #tpu.memory_space<vmem>>, %arg4: memref<256x256xbf16, #tpu.memory_space<vmem>>, %arg5: memref<16x256xbf16, #tpu.memory_space<vmem>>) attributes {dimension_semantics = [#tpu.dimension_semantics<parallel>, #tpu.dimension_semantics<parallel>], iteration_bounds = array<i64: 3, 2>, scalar_prefetch = 0 : i64, scratch_operands = 0 : i64, tpu.core_type = #tpu.core_type<tc>, window_params = [{transform_indices = @transform_0, window_bounds = array<i64: 16, 256>}, {pipeline_mode = #tpu.pipeline_mode<synchronous>, transform_indices = @transform_1, window_bounds = array<i64: 1, 256>}, {transform_indices = @transform_2, window_bounds = array<i64: 256, 256>}, {transform_indices = @transform_3, window_bounds = array<i64: 16, 256>}]} {
    %c0 = arith.constant 0 : index
    %c0_0 = arith.constant 0 : index
    %0 = vector.load %arg2[%c0, %c0_0] : memref<16x256xf32, #tpu.memory_space<vmem>>, vector<16x256xf32>
    %c0_1 = arith.constant 0 : index
    %c0_2 = arith.constant 0 : index
    %1 = vector.load %arg3[%c0_1, %c0_2] : memref<1x256xf32, #tpu.memory_space<vmem>>, vector<1x256xf32>
    %2 = arith.mulf %0, %0 : vector<16x256xf32>
    %cst = arith.constant dense<0.000000e+00> : vector<16xf32>
    %3 = vector.multi_reduction <add>, %2, %cst [1] : vector<16x256xf32> to vector<16xf32>
    %4 = vector.shape_cast %3 : vector<16xf32> to vector<16x1xf32>
    %cst_3 = arith.constant 2.560000e+02 : f32
    %5 = vector.broadcast %cst_3 : f32 to vector<16x1xf32>
    %6 = arith.divf %4, %5 : vector<16x1xf32>
    %cst_4 = arith.constant 9.99999974E-6 : f32
    %7 = vector.broadcast %cst_4 : f32 to vector<16x1xf32>
    %8 = arith.addf %6, %7 : vector<16x1xf32>
    %9 = math.rsqrt %8 : vector<16x1xf32>
    %10 = vector.broadcast %9 : vector<16x1xf32> to vector<16x256xf32>
    %11 = arith.mulf %0, %10 : vector<16x256xf32>
    %12 = vector.broadcast %1 : vector<1x256xf32> to vector<16x256xf32>
    %13 = arith.mulf %11, %12 : vector<16x256xf32>
    %14 = arith.truncf %13 : vector<16x256xf32> to vector<16x256xbf16>
    %c0_5 = arith.constant 0 : index
    %c0_6 = arith.constant 0 : index
    %15 = vector.load %arg4[%c0_5, %c0_6] : memref<256x256xbf16, #tpu.memory_space<vmem>>, vector<256x256xbf16>
    %cst_7 = arith.constant dense<0.000000e+00> : vector<16x256xf32>
    %16 = tpu.matmul %14, %15, %cst_7 {dimension_numbers = #tpu.dot_dimension_numbers<[1], [0], [0], [1], [0, 0, 1, 1], [], []>} : vector<16x256xbf16>, vector<256x256xbf16>, vector<16x256xf32> -> vector<16x256xf32>
    %17 = arith.truncf %16 : vector<16x256xf32> to vector<16x256xbf16>
    %c0_8 = arith.constant 0 : index
    %c0_9 = arith.constant 0 : index
    %18 = vector.load %arg5[%c0_8, %c0_9] : memref<16x256xbf16, #tpu.memory_space<vmem>>, vector<16x256xbf16>
    tpu.vector_store %arg5[%c0_8, %c0_9], %17 {strides = array<i32>} : memref<16x256xbf16, #tpu.memory_space<vmem>>, vector<16x256xbf16>,
    return
  }
  func.func @transform_0(%arg0: i32, %arg1: i32) -> (i32, i32) {
    %c0_i32 = arith.constant 0 : i32
    %c0_i32_0 = arith.constant 0 : i32
    return %arg1, %c0_i32 : i32, i32
  }
  func.func @transform_1(%arg0: i32, %arg1: i32) -> (i32, i32) {
    %c0_i32 = arith.constant 0 : i32
    %c0_i32_0 = arith.constant 0 : i32
    %c0_i32_1 = arith.constant 0 : i32
    return %c0_i32, %c0_i32_0 : i32, i32
  }
  func.func @transform_2(%arg0: i32, %arg1: i32) -> (i32, i32) {
    %c0_i32 = arith.constant 0 : i32
    %c0_i32_0 = arith.constant 0 : i32
    return %c0_i32, %arg0 : i32, i32
  }
  func.func @transform_3(%arg0: i32, %arg1: i32) -> (i32, i32) {
    %c0_i32 = arith.constant 0 : i32
    return %arg1, %arg0 : i32, i32
  }
}

</mosaic_0001>

<bundles_post_ra>
// kernel: tpu_custom_call.1
= control target key start
LH: loop header
LB: loop body
LE: loop exit
PB: predicated region body
PF: predicated region fallthrough
CT: control target
= control target key end

     0   :  { %s1708_s0 = inlined_call_operand.hbm [shape: f32[32,256], index: 0, kind: input, shape index: {}]   ;;  %s1709_s1 = inlined_call_operand.hbm [shape: f32[1,256], index: 1, kind: input, shape index: {}]   ;;  %s1710_s2 = inlined_call_operand.hbm [shape: bf16[256,768], index: 2, kind: input, shape index: {}]   ;;  %s1711_s3 = inlined_call_operand.hbm [shape: bf16[32,768], index: 3, kind: output, shape index: {}]  }
   0x1   :  { %1720 = sst [smem:[#allocation22_spill]] %s1708_s0 }
   0x2   :  { %1721 = sst [smem:[#allocation23_spill]] %s1709_s1 }
   0x3   :  { %1722 = sst [smem:[#allocation24_spill]] %s1711_s3 }
   0x4   :  { %8 = vsyncpa [#allocation3], 0 }
   0x5   :  { %10 = vsyncpa [#allocation3 + $0x1], 0 }
   0x6   :  { %11 = vsyncpa [#allocation6], 0 }
   0x7   :  { %12 = vsyncpa [#allocation4], 0 }
   0x8   :  { %14 = vsyncpa [#allocation4 + $0x1], 0  ;;  %s1334_s12 = smov 0   ;;  %s1336_s13 = smov 0  }
   0x9   :  { %s1338_s14 = smov 0   ;;  %s1340_s15 = smov 0  }
   0xa   :  { %s1342_s16 = smov 0   ;;  %s1344_s17 = smov 0  }
   0xb   :  { %s1346_s18 = smov 0   ;;  %s1348_s19 = smov 0  }
   0xc   :  { %s1350_s20 = smov 0   ;;  %s1352_s21 = smov 0  }
   0xd   :  { %s1354_s22 = smov 0   ;;  %s1356_s23 = smov 0  }
   0xe   :  { %s1358_s24 = smov 0   ;;  %s1360_s25 = smov 0  }
   0xf LB: > { %1723 = sst [smem:[#allocation13_spill]] %s1258_s14  ;;  %s29_s26 = sadd.s32 1, %s1294_s23  ;;  %s1302_s25 = sphi %s1360_s25, %s20_s25   ;;  %s1298_s24 = sphi %s1358_s24, %s1763_s24   ;;  %s1294_s23 = sphi %s1356_s23, %s1753_s23   ;;  %s1290_s22 = sphi %s1354_s22, %s1762_s22   ;;  %s1286_s21 = sphi %s1352_s21, %s1752_s21   ;;  %s1282_s20 = sphi %s1350_s20, %s1751_s20   ;;  %s1278_s19 = sphi %s1348_s19, %s1761_s19   ;;  %s1274_s18 = sphi %s1346_s18, %s1760_s18   ;;  %s1270_s17 = sphi %s1344_s17, %s1759_s17   ;;  %s1266_s16 = sphi %s1342_s16, %s1758_s16   ;;  %s1262_s15 = sphi %s1340_s15, %s1757_s15   ;;  %s1258_s14 = sphi %s1338_s14, %s1748_s14   ;;  %s1254_s13 = sphi %s1336_s13, %s1756_s13   ;;  %s1250_s12 = sphi %s1334_s12, %s1755_s12  }
  0x10   : > { %1724 = sst [smem:[#allocation14_spill]] %s1282_s20  ;;  %s32_s27 = sadd.s32 1, %s1298_s24 }
  0x11   : > { %1725 = sst [smem:[#allocation15_spill]] %s1294_s23  ;;  %p30_p0 = scmp.ge.s32.totalorder %s29_s26, 2 }
  0x12   : > { %s39_s28 = sadd.s32 1, %s1282_s20  ;;  %p46_p1 = scmp.ne.s32.totalorder %s1282_s20, %s1278_s19 }
  0x13   : > { %p47_p2 = scmp.eq.s32.totalorder %s1302_s25, 0  ;;  %s1765_s26 = smov (%p30_p0, %s29_s26), 0 }
  0x14   : > { %1726 = sst [smem:[#allocation16_spill]] %s1765_s26  ;;  %s1767_s27 = smov (!%p30_p0, %s32_s27), %s1298_s24 }
  0x15   : > { %s36_s29 = ssub.s32 %s1294_s23, %s1765_s26  ;;  %p1417_p3 = por %p47_p2, %p46_p1 }
  0x16   : > { %p34_p4 = scmp.ge.s32.totalorder %s1767_s27, 3  ;;  %p37_p5 = scmp.eq.s32.totalorder %s36_s29, 0 }
  0x17   : > { %p1715_p6 = scmp.lt.s32.totalorder %s1302_s25, 6  ;;  %s163_s6 = sand.u32 1, %s1302_s25  }
  0x18   : > { %s1769_s27 = smov (%p34_p4, %s1767_s27), 0  ;;  %s165_s9 = sand.u32 1, %s1282_s20  }
  0x19   : > { %1728 = sst [smem:[#allocation17_spill]] %s1769_s27  ;;  %s83_s5 = ssub.s32 %s1298_s24, %s1769_s27 }
  0x1a   : > { %s1425_s4 = scalar_select %p37_p5, %s1282_s20, %s39_s28  }
  0x1b   : > { %p84_p7 = scmp.eq.s32.totalorder %s83_s5, 0  ;;  %s111_s7 = sor.u32 %s83_s5, %s36_s29 }
  0x1c   : > { %1729 = sst [smem:[#allocation18_spill]] %s1425_s4  ;;  %p1430_p8 = scmp.eq.s32.totalorder %s111_s7, 0 }
  0x1d   : > { %s866_s10 = sshll.u32 %s1294_s23, 5  ;;  %s718_s11 = sshll.u32 %s165_s9, 5 }
  0x1e   : > { %s1731_s0 = sld [smem:[#allocation22_spill]]  ;;  %s167_s29 = scalar_lea.vmem [#allocation2], %s718_s11 }
  0x1f   : > { %s176_s7 = sshll.u32 %s167_s29, 4  ;;  %p916_p9 = pnand %p1715_p6, %p1417_p3  ;;  %s177_s7 = int_to_ptr.vmem [resolvable:$true] %s176_s7 }
  0x20   : > { %s1443_s3 = scalar_lea.sflag [#allocation3], %s163_s6  ;;  %s1304_s26 = smov 256  }
  0x21   : > { %s1305_s9 = smov 16   ;;  %s714_s30 = sadd.s32 4294967294, %s1302_s25  }
  0x22   : > { %p52_p10 = scmp.ne.s32.totalorder %s1278_s19, %s1274_s18  ;;  %s86_s6 = sadd.s32 1, %s1270_s17 }
  0x23   : > { %s1456_s11 = scalar_select %p84_p7, %s1270_s17, %s86_s6  }
  0x24   : > { %s173_s28 = scalar_lea.hbm %s1731_s0, %s866_s10  ;;  %s1447_s10 = sadd.s32 4294967295, %s1302_s25  }
  0x25   : > { %s174_s27 = sshll.u32 %s173_s28, 4  ;;  %p53_p11 = scmp.eq.s32.totalorder %s1447_s10, 0  ;;  %s175_s27 = int_to_ptr.hbm [resolvable:$true] %s174_s27 }
  0x26   : > { %918 = dma.hbm_to_vmem [thread:$0]  (!%p916_p9), %s175_s27, 512, %s177_s7, %s1443_s3, %s1304_s26, %s1304_s26, %s1305_s9  }
  0x27   : > { %1732 = sst [smem:[#allocation19_spill]] %s1456_s11  ;;  %p1460_p12 = por %p53_p11, %p52_p10 }
  0x28   : > { %p93_p13 = scmp.ne.s32.totalorder %s1270_s17, %s1266_s16  ;;  %p99_p0 = scmp.ne.s32.totalorder %s1266_s16, %s1262_s15 }
  0x29   : > { %s114_s28 = sadd.s32 1, %s1258_s14  ;;  %p124_p3 = scmp.ne.s32.totalorder %s1258_s14, %s1254_s13 }
  0x2a   : > { %p1471_p1 = por %p93_p13, %p47_p2  ;;  %p1479_p4 = por %p99_p0, %p53_p11 }
  0x2b   : > { %p125_p5 = scmp.eq.s32.totalorder %s1447_s10, 5  ;;  %p130_p2 = scmp.ne.s32.totalorder %s1254_s13, %s1250_s12 }
  0x2c   : > { %s1487_s5 = scalar_select %p1430_p8, %s1258_s14, %s114_s28  }
  0x2d   : > { %p1489_p7 = por %p125_p5, %p124_p3  ;;  %p131_p9 = scmp.eq.s32.totalorder %s714_s30, 5 }
  0x2e   : > { %1736 = sst [smem:[#allocation20_spill]] %s1487_s5  ;;  %p715_p10 = scmp.ge.s32.totalorder %s1302_s25, 1 }
  0x2f   : > { %p138_p13 = scmp.lt.s32.totalorder %s1302_s25, 7  ;;  %p1497_p6 = por %p131_p9, %p130_p2 }
  0x30   : > { %s1740_s1 = sld [smem:[#allocation23_spill]]  ;;  %p1742_p0 = scmp.lt.s32.totalorder %s1302_s25, 6 }
  0x31   : > { %s1738_s7 = scalar_select %p1497_p6, 1, 0 }
  0x32   : > { %p1504_p8 = pnand %p715_p10, %p138_p13  ;;  %p1512_p3 = pnand %p1742_p0, %p1471_p1 }
  0x33   : > { %1739 = sst [smem:[#allocation21_spill]] %s1738_s7  ;;  %s1306_s28 = smov [#allocation5]  }
  0x34   : > { %p911_p5 = pneg %p1504_p8  ;;  %s152_s0 = sshll.u32 %s1306_s28, 4  ;;  %s153_s0 = int_to_ptr.vmem [resolvable:$true] %s152_s0 }
  0x35   : > { %s188_s26 = sand.u32 1, %s1270_s17   ;;  %s1307_s14 = smov 384  }
  0x36   : > { %s150_s8 = sshll.u32 %s1740_s1, 4  ;;  %p912_p2 = pnand %p911_p5, %p53_p11  ;;  %s151_s8 = int_to_ptr.hbm [resolvable:$true] %s150_s8 }
  0x37   : > { %s722_s9 = sshll.u32 %s188_s26, 8  ;;  %s867_s1 = sshll.u32 %s1298_s24, 3 }
  0x38   : > { %914 = dma.hbm_to_vmem [thread:$0]  (!%p912_p2), %s151_s8, 32, %s153_s0, [#allocation6]  }
  0x39   : > { %s195_s4 = scalar_lea.hbm %s1710_s2, %s867_s1  ;;  %s190_s20 = scalar_lea.vmem [#allocation7], %s722_s9 }
  0x3a   : > { %s198_s11 = sshll.u32 %s190_s20, 4  ;;  %s196_s5 = sshll.u32 %s195_s4, 4  ;;  %s199_s11 = int_to_ptr.vmem [resolvable:$true] %s198_s11  ;;  %s197_s5 = int_to_ptr.hbm [resolvable:$true] %s196_s5 }
  0x3b   : > { %s1308_s28 = smov 128   ;;  %s1309_s7 = smov 8  }
  0x3c   : > { %921 = dma.hbm_to_vmem [thread:$0]  (!%p1512_p3), %s197_s5, 4096, %s199_s11, %s1443_s3, %s1307_s14, %s1308_s28, %s1309_s7  }
  0x3d   : > { %210 = sbr.rel (%p1504_p8) target bundleno = 380 (0x17c), region = 32  ;;  %s212_s0 = sand.u32 (!%p1504_p8), 1, %s1447_s10  }
  0x3e   : > { %s214_s8 = sand.u32 (!%p1504_p8), 1, %s1278_s19   ;;  %s213_s1 = scalar_lea.sflag (!%p1504_p8), [#allocation3], %s212_s0 }
  0x3f   : > { %s726_s23 = sshll.u32 (!%p1504_p8), %s214_s8, 5 }
  0x40   : > { %s216_s26 = scalar_lea.vmem (!%p1504_p8), [#allocation2], %s726_s23 }
  0x42   : > { %1233 = dma.done.wait (%p1460_p12), %s213_s1, 512  }
  0x43   : > { %1235 = vsyncadd (%p1460_p12), %s213_s1, 4294966784 }
  0x44   : > { %1237 = dma.done.wait (%p53_p11), [#allocation6], 32  }
  0x45   : > { %1239 = vsyncadd (%p53_p11), [#allocation6], 4294967264  ;;  %s229_s14 = sand.u32 1, %s1266_s16  }
  0x46   : > { %s728_s20 = sshll.u32 %s229_s14, 8 }
  0x47   : > { %s1541_s4 = scalar_lea.vmem [#allocation7], %s728_s20 }
  0x48   : > { %1241 = dma.done.wait (%p1479_p4), %s213_s1, 4096  }
  0x49   : > { %1243 = vsyncadd (%p1479_p4), %s213_s1, 4294963200  ;;  %v1547_v0 = vld [vmem:[%s216_s26] sm:$0xff]  ;;  %v1549_v1 = vld [vmem:[%s216_s26 + $0x8] sm:$0xff]  ;;  %v1310_v17 = vmov 256.0   ;;  %s900_s3 = smul.u32 12, %s1286_s21  ;;  %s860_s10 = sshll.u32 %s1290_s22, 1 }
  0x4a   : > { %v269_v2 = vmul.f32 %v1547_v0, %v1547_v0  ;;  %v270_v3 = vmul.f32 %v1549_v1, %v1549_v1  ;;  %v1555_v4 = vld [vmem:[%s216_s26 + $0x10] sm:$0xff]  ;;  %v1557_v5 = vld [vmem:[%s216_s26 + $0x18] sm:$0xff]  ;;  %1052 = vrcp.f32 %v1310_v17  ;;  %v780_v23 = vld [vmem:[%s1541_s4 + $0x60] sm:$0xf]  ;;  %s257_s11 = sand.u32 1, %s1254_s13   ;;  %s1744_s30 = sld [smem:[#allocation24_spill]] }
  0x4b   : > { %v271_v7 = vmul.f32 %v1555_v4, %v1555_v4  ;;  %v272_v8 = vmul.f32 %v1557_v5, %v1557_v5  ;;  %v788_v10 = vld [vmem:[%s1541_s4 + $0x70] sm:$0xf]  ;;  %v883_v11 = vld [vmem:[%s1541_s4 + $0x74] sm:$0xf0]  ;;  %v882_v15 = vld [vmem:[%s1541_s4 + $0x74] sm:$0xf]  ;;  %s590_s27 = sadd.s32 %s900_s3, %s860_s10 }
  0x4c   : > { %v273_v6 = vadd.f32 %v270_v3, %v269_v2  ;;  %v852_v12 = vld [vmem:[%s1541_s4 + $0xf0] sm:$0xf]  ;;  %v789_v13 = vor.u32 %v883_v11, %v788_v10  ;;  %v899_v14 = vld [vmem:[%s1541_s4 + $0xf4] sm:$0xf0]  ;;  %v790_v16 = vld [vmem:[%s1541_s4 + $0x78] sm:$0xf0] }
  0x4d   : > { %v276_v9 = vadd.f32 %v272_v8, %v271_v7  ;;  %v853_v18 = vor.u32 %v899_v14, %v852_v12  ;;  %v793_v19 = vor.u32 %v882_v15, %v790_v16  ;;  %v898_v20 = vld [vmem:[%s1541_s4 + $0xf4] sm:$0xf]  ;;  %v854_v21 = vld [vmem:[%s1541_s4 + $0xf8] sm:$0xf0]  ;;  %v881_v24 = vld [vmem:[%s1541_s4 + $0x64] sm:$0xf0] }
  0x4e   : > { %274 = vadd.xlane.f32.xlu0 %v273_v6  ;;  %517 = vmatpush.bf16.msra.mxu0 %v789_v13  ;;  %v857_v22 = vor.u32 %v898_v20, %v854_v21  ;;  %v844_v25 = vld [vmem:[%s1541_s4 + $0xe0] sm:$0xf]  ;;  %v781_v26 = vor.u32 %v881_v24, %v780_v23  ;;  %v897_v27 = vld [vmem:[%s1541_s4 + $0xe4] sm:$0xf0]  ;;  %v880_v28 = vld [vmem:[%s1541_s4 + $0x64] sm:$0xf] }
  0x4f   : > { %531 = vmatpush.bf16.msra.mxu1 %v853_v18  ;;  %545 = vmatpush.bf16.msra.mxu2 %v793_v19  ;;  %v782_v29 = vld [vmem:[%s1541_s4 + $0x68] sm:$0xf0]  ;;  %v845_v30 = vor.u32 %v897_v27, %v844_v25  ;;  %v896_v32 = vld [vmem:[%s1541_s4 + $0xe4] sm:$0xf]  ;;  %v772_v36 = vld [vmem:[%s1541_s4 + $0x50] sm:$0xf] }
  0x50   : > { %559 = vmatpush.bf16.msra.mxu3 %v857_v22  ;;  %v785_v31 = vor.u32 %v880_v28, %v782_v29  ;;  %v846_v33 = vld [vmem:[%s1541_s4 + $0xe8] sm:$0xf0]  ;;  %v1579_v35 = vpop.eup %1052  ;;  %v879_v37 = vld [vmem:[%s1541_s4 + $0x54] sm:$0xf0]  ;;  %v836_v38 = vld [vmem:[%s1541_s4 + $0xd0] sm:$0xf] }
  0x51   : > { %v849_v34 = vor.u32 %v896_v32, %v846_v33  ;;  %v773_v39 = vor.u32 %v879_v37, %v772_v36  ;;  %v895_v40 = vld [vmem:[%s1541_s4 + $0xd4] sm:$0xf0]  ;;  %v878_v41 = vld [vmem:[%s1541_s4 + $0x54] sm:$0xf]  ;;  %v774_v42 = vld [vmem:[%s1541_s4 + $0x58] sm:$0xf0]  ;;  %vm284_vm0 = vweird.f32 %v1579_v35 }
  0x52   : > { %518 = vmatpush.bf16.msra.mxu0 %v781_v26  ;;  %v837_v43 = vor.u32 %v895_v40, %v836_v38  ;;  %v777_v44 = vor.u32 %v878_v41, %v774_v42  ;;  %v894_v45 = vld [vmem:[%s1541_s4 + $0xd4] sm:$0xf]  ;;  %v838_v46 = vld [vmem:[%s1541_s4 + $0xd8] sm:$0xf0]  ;;  %v280_v47 = vmul.f32 256.0, %v1579_v35  ;;  %s729_s18 = sshll.u32 %s257_s11, 4 }
  0x53   : > { %532 = vmatpush.bf16.msra.mxu1 %v845_v30  ;;  %546 = vmatpush.bf16.msra.mxu2 %v785_v31  ;;  %v841_v48 = vor.u32 %v894_v45, %v838_v46  ;;  %v764_v49 = vld [vmem:[%s1541_s4 + $0x40] sm:$0xf]  ;;  %v877_v50 = vld [vmem:[%s1541_s4 + $0x44] sm:$0xf0]  ;;  %v876_v54 = vld [vmem:[%s1541_s4 + $0x44] sm:$0xf] }
  0x54   : > { %560 = vmatpush.bf16.msra.mxu3 %v849_v34  ;;  %v828_v51 = vld [vmem:[%s1541_s4 + $0xc0] sm:$0xf]  ;;  %v765_v52 = vor.u32 %v877_v50, %v764_v49  ;;  %v893_v53 = vld [vmem:[%s1541_s4 + $0xc4] sm:$0xf0]  ;;  %v766_v55 = vld [vmem:[%s1541_s4 + $0x48] sm:$0xf0] }
  0x55   : > { %v829_v56 = vor.u32 %v893_v53, %v828_v51  ;;  %v769_v57 = vor.u32 %v876_v54, %v766_v55  ;;  %v892_v58 = vld [vmem:[%s1541_s4 + $0xc4] sm:$0xf]  ;;  %v830_v59 = vld [vmem:[%s1541_s4 + $0xc8] sm:$0xf0]  ;;  %v281_v60 = vsub.f32 1.0, %v280_v47  ;;  %s862_s5 = sshll.u32 %s590_s27, 2 }
  0x56   : > { %277 = vadd.xlane.f32.xlu0 %v276_v9  ;;  %519 = vmatpush.bf16.msra.mxu0 %v773_v39  ;;  %v833_v61 = vor.u32 %v892_v58, %v830_v59  ;;  %v756_v62 = vld [vmem:[%s1541_s4 + $0x30] sm:$0xf]  ;;  %v875_v63 = vld [vmem:[%s1541_s4 + $0x34] sm:$0xf0]  ;;  %v874_v7 = vld [vmem:[%s1541_s4 + $0x34] sm:$0xf]  ;;  %s592_s9 = scalar_lea.hbm %s1744_s30, %s862_s5 }
  0x57   : > { %533 = vmatpush.bf16.msra.mxu1 %v837_v43  ;;  %547 = vmatpush.bf16.msra.mxu2 %v777_v44  ;;  %v820_v2 = vld [vmem:[%s1541_s4 + $0xb0] sm:$0xf]  ;;  %v757_v3 = vor.u32 %v875_v63, %v756_v62  ;;  %v891_v6 = vld [vmem:[%s1541_s4 + $0xb4] sm:$0xf0]  ;;  %v758_v8 = vld [vmem:[%s1541_s4 + $0x38] sm:$0xf0]  ;;  %v282_v13 = vmul.f32 %v1579_v35, %v281_v60 }
  0x58   : > { %561 = vmatpush.bf16.msra.mxu3 %v841_v48  ;;  %v821_v9 = vor.u32 %v891_v6, %v820_v2  ;;  %v761_v10 = vor.u32 %v874_v7, %v758_v8  ;;  %v890_v11 = vld [vmem:[%s1541_s4 + $0xb4] sm:$0xf]  ;;  %v822_v12 = vld [vmem:[%s1541_s4 + $0xb8] sm:$0xf0]  ;;  %v748_v15 = vld [vmem:[%s1541_s4 + $0x20] sm:$0xf] }
  0x59   : > { %v825_v14 = vor.u32 %v890_v11, %v822_v12  ;;  %v873_v16 = vld [vmem:[%s1541_s4 + $0x24] sm:$0xf0]  ;;  %v812_v17 = vld [vmem:[%s1541_s4 + $0xa0] sm:$0xf]  ;;  %v872_v20 = vld [vmem:[%s1541_s4 + $0x24] sm:$0xf]  ;;  %v283_v26 = vadd.f32 %v1579_v35, %v282_v13 }
  0x5a   : > { %520 = vmatpush.bf16.msra.mxu0 %v765_v52  ;;  %v749_v18 = vor.u32 %v873_v16, %v748_v15  ;;  %v889_v19 = vld [vmem:[%s1541_s4 + $0xa4] sm:$0xf0]  ;;  %v750_v21 = vld [vmem:[%s1541_s4 + $0x28] sm:$0xf0]  ;;  %v888_v24 = vld [vmem:[%s1541_s4 + $0xa4] sm:$0xf] }
  0x5b   : > { %534 = vmatpush.bf16.msra.mxu1 %v829_v56  ;;  %548 = vmatpush.bf16.msra.mxu2 %v769_v57  ;;  %v813_v22 = vor.u32 %v889_v19, %v812_v17  ;;  %v753_v23 = vor.u32 %v872_v20, %v750_v21  ;;  %v814_v25 = vld [vmem:[%s1541_s4 + $0xa8] sm:$0xf0]  ;;  %v740_v28 = vld [vmem:[%s1541_s4 + $0x10] sm:$0xf]  ;;  %v871_v29 = vld [vmem:[%s1541_s4 + $0x14] sm:$0xf0]  ;;  %v285_v41 = vsel %vm284_vm0, %v1579_v35, %v283_v26 }
  0x5c   : > { %562 = vmatpush.bf16.msra.mxu3 %v833_v61  ;;  %v817_v27 = vor.u32 %v888_v24, %v814_v25  ;;  %v804_v30 = vld [vmem:[%s1541_s4 + $0x90] sm:$0xf]  ;;  %v741_v31 = vor.u32 %v871_v29, %v740_v28  ;;  %v887_v32 = vld [vmem:[%s1541_s4 + $0x94] sm:$0xf0]  ;;  %v870_v33 = vld [vmem:[%s1541_s4 + $0x14] sm:$0xf] }
  0x5d   : > { %v742_v34 = vld [vmem:[%s1541_s4 + $0x18] sm:$0xf0]  ;;  %v805_v36 = vor.u32 %v887_v32, %v804_v30  ;;  %v886_v38 = vld [vmem:[%s1541_s4 + $0x94] sm:$0xf]  ;;  %v732_v40 = vld [vmem:[%s1541_s4] sm:$0xf] }
  0x5e   : > { %521 = vmatpush.bf16.msra.mxu0 %v757_v3  ;;  %v745_v37 = vor.u32 %v870_v33, %v742_v34  ;;  %v806_v39 = vld [vmem:[%s1541_s4 + $0x98] sm:$0xf0]  ;;  %v869_v43 = vld [vmem:[%s1541_s4 + $0x4] sm:$0xf0]  ;;  %v796_v44 = vld [vmem:[%s1541_s4 + $0x80] sm:$0xf] }
  0x5f   : > { %535 = vmatpush.bf16.msra.mxu1 %v821_v9  ;;  %549 = vmatpush.bf16.msra.mxu2 %v761_v10  ;;  %v809_v42 = vor.u32 %v886_v38, %v806_v39  ;;  %v885_v45 = vld [vmem:[%s1541_s4 + $0x84] sm:$0xf0]  ;;  %v733_v46 = vor.u32 %v869_v43, %v732_v40  ;;  %v868_v48 = vld [vmem:[%s1541_s4 + $0x4] sm:$0xf]  ;;  %v734_v49 = vld [vmem:[%s1541_s4 + $0x8] sm:$0xf0] }
  0x60   : > { %563 = vmatpush.bf16.msra.mxu3 %v825_v14  ;;  %v797_v47 = vor.u32 %v885_v45, %v796_v44  ;;  %v884_v50 = vld [vmem:[%s1541_s4 + $0x84] sm:$0xf]  ;;  %v737_v52 = vor.u32 %v868_v48, %v734_v49  ;;  %v798_v53 = vld [vmem:[%s1541_s4 + $0x88] sm:$0xf0]  ;;  %v268_v10 = vld [vmem:[#allocation5] sm:$0x3] }
  0x61   : > { %v801_v55 = vor.u32 %v884_v50, %v798_v53  ;;  %v315_v14 = vperm.slane %v268_v10, 0  ;;  %v316_v16 = vperm.slane %v268_v10, 1  ;;  %s259_s29 = scalar_lea.vmem [#allocation8], %s729_s18  ;;  %s595_s21 = sshll.u32 %s592_s9, 4  ;;  %s596_s21 = int_to_ptr.hbm [resolvable:$true] %s595_s21 }
  0x62   : > { %522 = vmatpush.bf16.msra.mxu0 %v749_v18  ;;  %s593_s28 = sshll.u32 %s259_s29, 4  ;;  %s578_s22 = scalar_lea.sflag [#allocation4], %s257_s11  ;;  %s594_s28 = int_to_ptr.vmem [resolvable:$true] %s593_s28 }
  0x63   : > { %536 = vmatpush.bf16.msra.mxu1 %v813_v22  ;;  %550 = vmatpush.bf16.msra.mxu2 %v753_v23  ;;  %s1162_s0 = sshra.s32 %s596_s21, 4  ;;  %s1168_s26 = scalar_lea.hbm %s1744_s30, 96  ;;  %s1163_s0 = int_to_ptr.hbm [resolvable:$true] %s1162_s0 }
  0x64   : > { %564 = vmatpush.bf16.msra.mxu3 %v817_v27  ;;  %s1164_s8 = scalar_lea.hbm %s1163_s0, 16  ;;  %p1169_p4 = scmp.lt.s32.totalorder %s1163_s0, %s1744_s30 }
  0x65   : > { %p1165_p11 = scmp.ne.s32.totalorder %s1163_s0, %s1164_s8  ;;  %p1170_p9 = scmp.lt.s32.totalorder %s1168_s26, %s1164_s8 }
  0x66   : > { %523 = vmatpush.bf16.msra.mxu0 %v741_v31 }
  0x67   : > { %537 = vmatpush.bf16.msra.mxu1 %v805_v36  ;;  %551 = vmatpush.bf16.msra.mxu2 %v745_v37  ;;  %p1166_p12 = pnand %p1165_p11, %p1489_p7  ;;  %p1171_p10 = por %p1170_p9, %p1169_p4 }
  0x68   : > { %565 = vmatpush.bf16.msra.mxu3 %v809_v42 }
  0x69   : > { %p1167_p1 = pneg %p1166_p12 }
  0x6a   : > { %524 = vmatpush.bf16.msra.mxu0 %v733_v46 }
  0x6b   : > { %538 = vmatpush.bf16.msra.mxu1 %v797_v47  ;;  %552 = vmatpush.bf16.msra.mxu2 %v737_v52  ;;  %p1172_p13 = pnand %p1171_p10, %p1167_p1 }
  0x6c   : > { %566 = vmatpush.bf16.msra.mxu3 %v801_v55 }
  0xc1   : > { %v275_v51 = vpop.xlane.xlu0 %274 }
  0xc2   : > { %v286_v54 = vmul.f32 %v285_v41, %v275_v51 }
  0xc4   : > { %v288_v35 = vadd.f32 1e-05, %v286_v54 }
  0xc6   : > { %1054 = vrsqrt.f32 %v288_v35  ;;  %vm296_vm2 = vweird.f32 %v288_v35 }
  0xc9   : > { %v278_v56 = vpop.xlane.xlu0 %277 }
  0xca   : > { %v287_v57 = vmul.f32 %v285_v41, %v278_v56 }
  0xcc   : > { %v1055_v58 = vpop.eup %1054  ;;  %v289_v59 = vadd.f32 1e-05, %v287_v57 }
  0xcd   : > { %v291_v60 = vmul.f32 %v1055_v58, %v288_v35  ;;  %vm297_vm1 = vweird.f32 %v1055_v58 }
  0xce   : > { %1056 = vrsqrt.f32 %v289_v59  ;;  %vm298_vm3 = vmor %vm296_vm2, %vm297_vm1  ;;  %vm306_vm5 = vweird.f32 %v289_v59 }
  0xcf   : > { %v292_v61 = vmul.f32 %v1055_v58, %v291_v60 }
  0xd1   : > { %v293_v62 = vmul.f32 0.5, %v292_v61 }
  0xd3   : > { %v294_v63 = vsub.f32 1.5, %v293_v62 }
  0xd4   : > { %v1057_v2 = vpop.eup %1056 }
  0xd5   : > { %v301_v3 = vmul.f32 %v1057_v2, %v289_v59  ;;  %v295_v6 = vmul.f32 %v1055_v58, %v294_v63  ;;  %vm307_vm4 = vweird.f32 %v1057_v2 }
  0xd6   : > { %vm308_vm6 = vmor %vm306_vm5, %vm307_vm4 }
  0xd7   : > { %v302_v7 = vmul.f32 %v1057_v2, %v301_v3  ;;  %v299_v11 = vsel %vm298_vm3, %v1055_v58, %v295_v6 }
  0xd8   : > { %v310_v13 = vmul.f32 %v299_v11, %v1547_v0  ;;  %v311_v15 = vmul.f32 %v299_v11, %v1549_v1 }
  0xd9   : > { %v303_v8 = vmul.f32 0.5, %v302_v7 }
  0xda   : > { %v319_v20 = vmul.f32 %v315_v14, %v310_v13  ;;  %v320_v22 = vmul.f32 %v316_v16, %v311_v15 }
  0xdb   : > { %v304_v9 = vsub.f32 1.5, %v303_v8 }
  0xdd   : > { %v305_v12 = vmul.f32 %v1057_v2, %v304_v9 }
  0xdf   : > { %v309_v17 = vsel %vm308_vm6, %v1057_v2, %v305_v12 }
  0xe0   : > { %v312_v18 = vmul.f32 %v309_v17, %v1555_v4  ;;  %v313_v19 = vmul.f32 %v309_v17, %v1557_v5 }
  0xe2   : > { %v321_v21 = vmul.f32 %v315_v14, %v312_v18  ;;  %v322_v23 = vmul.f32 %v316_v16, %v313_v19 }
  0xe4   : > { %v323_v24 = vpack.c.bf16 %v321_v21, %v319_v20  ;;  %v324_v25 = vpack.c.bf16 %v322_v23, %v320_v22 }
  0xe6   : > { %525 = vmatmul.bf16.vlgmr.msra.gmra.mxu0 %v323_v24  ;;  %539 = vmatmul.bf16.vlgmr.msra.gmra.mxu1 %v324_v25 }
  0xe7   : > { %553 = vmatmul.bf16.vlgmr.msra.gmra.mxu2 %v323_v24  ;;  %567 = vmatmul.bf16.vlgmr.msra.gmra.mxu3 %v324_v25 }
 0x163   : > { %v526_v0 = vpop.f32.mrf.mxu0  ;;  %v540_v1 = vpop.f32.mrf.mxu1 }
 0x164   : > { %v541_v5 = vadd.f32 %v540_v1, %v526_v0 }
 0x16a   : > { %v554_v4 = vpop.f32.mrf.mxu2  ;;  %v568_v26 = vpop.f32.mrf.mxu3 }
 0x16b   : > { %v569_v27 = vadd.f32 %v568_v26, %v554_v4  ;;  %v528_v29 = vpop.f32.mrf.mxu0  ;;  %v542_v30 = vpop.f32.mrf.mxu1 }
 0x16c   : > { %v543_v33 = vadd.f32 %v542_v30, %v528_v29 }
 0x16d   : > { %v573_v28 = vpack.c.bf16 %v569_v27, %v541_v5 }
 0x16f   : > { %575 = vst [vmem:[%s259_s29] sm:$0xff] %v573_v28 }
 0x172   : > { %v556_v31 = vpop.f32.mrf.mxu2  ;;  %v570_v32 = vpop.f32.mrf.mxu3 }
 0x173   : > { %v571_v34 = vadd.f32 %v570_v32, %v556_v31 }
 0x175   : > { %v574_v36 = vpack.c.bf16 %v571_v34, %v543_v33 }
 0x177   : > { %576 = vst [vmem:[%s259_s29 + $0x8] sm:$0xff] %v574_v36 }
 0x178   : > { %1175 = shalt.err (!%p1172_p13)
}
 0x179   : > { %s1311_s4 = smov 128   ;;  %s1312_s3 = smov 384  }
 0x17a   : > { %s1313_s10 = smov 8  }
 0x17b   : > { %909 = dma.vmem_to_hbm [thread:$0]  (%p1489_p7), %s594_s28, 256, %s596_s21, %s578_s22, %s1311_s4, %s1312_s3, %s1313_s10  }
 0x17c PF: > { %p929_p8 = scmp.ge.s32.totalorder %s1302_s25, 2  ;;  %s610_s27 = sand.u32 1, %s1250_s12  }
 0x17d   : > { %s611_s18 = scalar_lea.sflag [#allocation4], %s610_s27 }
 0x17e   : > { %p923_p0 = pnand %p929_p8, %p1497_p6 }
 0x180   : > { %p924_p3 = pneg %p923_p0 }
 0x182   : > { %1245 = dma.done.wait (%p924_p3), %s611_s18, 256  }
 0x183   : > { %1247 = vsyncadd (%p924_p3), %s611_s18, 4294967040  ;;  %s20_s25 = sadd.s32 1, %s1302_s25   ;;  %s1747_s15 = sld [smem:[#allocation13_spill]] }
 0x184   : > { %p1661_p5 = scmp.ge.s32.totalorder %s20_s25, 8   ;;  %s1748_s14 = sld [smem:[#allocation20_spill]] }
 0x185   : > { %s1749_s7 = sld [smem:[#allocation19_spill]]  ;;  %s1755_s12 = smov %s1254_s13 }
 0x186   : > { %s1750_s6 = sld [smem:[#allocation14_spill]]  ;;  %s1760_s18 = smov %s1278_s19 }
 0x187   : > { %s1751_s20 = sld [smem:[#allocation18_spill]]  ;;  %s1762_s22 = smov %s1298_s24 }
 0x188   : > { %s1752_s21 = sld [smem:[#allocation15_spill]] }
 0x189   : > { %s1753_s23 = sld [smem:[#allocation16_spill]]  ;;  %s1756_s13 = smov %s1747_s15 }
 0x18a   : > { %s1754_s9 = sld [smem:[#allocation17_spill]]  ;;  %s1757_s15 = smov %s1266_s16 }
 0x18b   : > { %s1758_s16 = smov %s1270_s17  ;;  %s1759_s17 = smov %s1749_s7 }
 0x18c   : > { %s1761_s19 = smov %s1750_s6  ;;  %19 = sbr.rel (!%p1661_p5) target bundleno = 15 (0xf), region = 92 }
 0x190   : > { %s1763_s24 = smov %s1754_s9 }
 0x191   :  { %617 = vsyncpa [#allocation3], 1 }
 0x192   :  { %619 = vsyncpa [#allocation3 + $0x1], 1 }
 0x193   :  { %620 = vsyncpa [#allocation6], 1 }
 0x194   :  { %621 = vsyncpa [#allocation4], 1 }
 0x195   :  { %623 = vsyncpa [#allocation4 + $0x1], 1 }

</bundles_post_ra>
